<compile_context>
chip_gen: v6e
topology: v6e:2x2x1
jax: 0.10.0
libtpu: 0.0.40
codegen_flags: <defaults>
</compile_context>

<pallas_src>
import jax
import jax.numpy as jnp
from jax.experimental import pallas as pl
from jax.experimental.pallas import tpu as pltpu

EPS = 1e-5  # PyTorch BatchNorm1d default


def _round_up(n, m):
    return ((n + m - 1) // m) * m


def _make_kernel(inv_n):
    def kernel(x_ref, w1_ref, g_ref, bta_ref, w2_ref, b2_ref, o_ref,
               sum_ref, sumsq_ref, scale_ref, shift_ref):
        phase = pl.program_id(0)
        bt = pl.program_id(1)
        nbt = pl.num_programs(1)

        # fc1 (MXU). The fc1 bias is intentionally omitted: training-mode BatchNorm
        # subtracts the per-feature batch mean, which cancels any pre-BN bias exactly.
        h = jnp.dot(x_ref[...], w1_ref[...], preferred_element_type=jnp.float32)

        @pl.when(phase == 0)
        def _stats():
            @pl.when(bt == 0)
            def _init():
                sum_ref[...] = jnp.zeros_like(sum_ref)
                sumsq_ref[...] = jnp.zeros_like(sumsq_ref)

            # One-pass stats: sum and sum-of-squares (var = E[h^2] - mean^2).
            sum_ref[...] = sum_ref[...] + jnp.sum(h, axis=0, keepdims=True)
            sumsq_ref[...] = sumsq_ref[...] + jnp.sum(h * h, axis=0, keepdims=True)

            @pl.when(bt == nbt - 1)
            def _finalize():
                mean = sum_ref[...] * inv_n
                var = jnp.maximum(sumsq_ref[...] * inv_n - mean * mean, 0.0)
                scale = g_ref[...] * jax.lax.rsqrt(var + EPS)  # rsqrt -> EUP slot
                scale_ref[...] = scale
                shift_ref[...] = bta_ref[...] - mean * scale

        @pl.when(phase == 1)
        def _apply():
            # Folded BN (single FMA) + ReLU.
            a = jnp.maximum(h * scale_ref[...] + shift_ref[...], 0.0)
            # fc2 (MXU), lane-dense padded output columns (unmasked stores).
            o_ref[...] = (jnp.dot(a, w2_ref[...], preferred_element_type=jnp.float32)
                          + b2_ref[...]).astype(o_ref.dtype)

    return kernel


def classifier_two_layer(x, w1, b1, gamma, beta, w2, b2, *, block_b=256):
    """relu(BN_train(x @ w1 [+ b1])) @ w2 + b2.

    b1 is accepted for parity with the PyTorch module but is not passed to the
    kernel: training-mode BatchNorm's mean subtraction cancels it exactly.
    """
    del b1  # algebraically cancelled by BN (training mode)
    B, IN = x.shape
    H = w1.shape[1]
    OUT = w2.shape[1]

    # Lane-dense output: pad fc2 columns to a multiple of 128.
    OUT_PAD = _round_up(OUT, 128)
    if OUT_PAD != OUT:
        w2 = jnp.pad(w2, ((0, 0), (0, OUT_PAD - OUT)))
        b2 = jnp.pad(b2, (0, OUT_PAD - OUT))

    # Batch tiling (sublane-aligned). Zero-padded rows are harmless: with b1
    # dropped they contribute exactly 0 to sum / sum-of-squares, and the stats
    # are normalized by the true batch size B.
    Bt = min(block_b, _round_up(B, 8))
    Bp = _round_up(B, Bt)
    if Bp != B:
        x = jnp.pad(x, ((0, Bp - B), (0, 0)))
    nbt = Bp // Bt

    kernel = _make_kernel(1.0 / B)

    # grid: (phase, batch-tile); batch (the BN reduction axis) last.
    # Both axes "arbitrary": phase 1 depends on the cross-tile accumulation of phase 0.
    # TODO(synk): for v7x megacore, split the hidden dim as a "parallel" axis
    # (per-feature BN stats make H-tiles independent) to engage the second TensorCore.
    grid_spec = pltpu.PrefetchScalarGridSpec(
        num_scalar_prefetch=0,
        grid=(2, nbt),
        in_specs=[
            pl.BlockSpec((Bt, IN), lambda p, b: (b, 0)),       # x, streamed per tile
            pl.BlockSpec((IN, H), lambda p, b: (0, 0)),        # w1, resident
            pl.BlockSpec((1, H), lambda p, b: (0, 0)),         # gamma, resident
            pl.BlockSpec((1, H), lambda p, b: (0, 0)),         # beta, resident
            pl.BlockSpec((H, OUT_PAD), lambda p, b: (0, 0)),   # w2 (padded), resident
            pl.BlockSpec((1, OUT_PAD), lambda p, b: (0, 0)),   # b2 (padded), resident
        ],
        # p*b parks the output on block 0 through the stats phase (no garbage
        # write-backs) and walks the batch tiles during the apply phase.
        out_specs=pl.BlockSpec((Bt, OUT_PAD), lambda p, b: (p * b, 0)),
        scratch_shapes=[pltpu.VMEM((1, H), jnp.float32)] * 4,  # sum, sumsq, scale, shift
    )

    flops = 2 * Bp * IN * H * 2 + 2 * Bp * H * OUT_PAD  # fc1 in both phases + fc2
    bytes_accessed = 4 * (2 * Bp * IN + IN * H + H * OUT_PAD
                          + 2 * H + OUT_PAD + Bp * OUT_PAD)

    out = pl.pallas_call(
        kernel,
        out_shape=jax.ShapeDtypeStruct((Bp, OUT_PAD), jnp.float32),
        grid_spec=grid_spec,
        compiler_params=pltpu.CompilerParams(
            dimension_semantics=("arbitrary", "arbitrary")),
        cost_estimate=pl.CostEstimate(flops=flops, transcendentals=H,
                                      bytes_accessed=bytes_accessed),
    )(x, w1, gamma.reshape(1, -1), beta.reshape(1, -1), w2, b2.reshape(1, -1))

    return out[:B, :OUT]


def reference(x, w1, b1, gamma, beta, w2, b2):
    h = x @ w1 + b1
    mean = jnp.mean(h, axis=0, keepdims=True)
    var = jnp.mean((h - mean) ** 2, axis=0, keepdims=True)
    h = (h - mean) / jnp.sqrt(var + EPS) * gamma + beta
    h = jnp.maximum(h, 0.0)
    return h @ w2 + b2


if __name__ == "__main__":
    # Linear(32 -> 128) -> BatchNorm1d(128) -> ReLU -> Linear(128 -> 10)
    B, in_features, hidden_features, out_features = 8, 32, 128, 10

    key = jax.random.PRNGKey(0)
    kx, kw1, kb1, kg, kbt, kw2, kb2 = jax.random.split(key, 7)

    x = jax.random.normal(kx, (B, in_features), dtype=jnp.float32)

    # PyTorch-style uniform(-1/sqrt(fan_in), 1/sqrt(fan_in)) init
    lim1 = 1.0 / jnp.sqrt(in_features)
    w1 = jax.random.uniform(kw1, (in_features, hidden_features), jnp.float32, -lim1, lim1)
    b1 = jax.random.uniform(kb1, (hidden_features,), jnp.float32, -lim1, lim1)

    gamma = 1.0 + 0.1 * jax.random.normal(kg, (hidden_features,), jnp.float32)
    beta = 0.1 * jax.random.normal(kbt, (hidden_features,), jnp.float32)

    lim2 = 1.0 / jnp.sqrt(hidden_features)
    w2 = jax.random.uniform(kw2, (hidden_features, out_features), jnp.float32, -lim2, lim2)
    b2 = jax.random.uniform(kb2, (out_features,), jnp.float32, -lim2, lim2)

    out = classifier_two_layer(x, w1, b1, gamma, beta, w2, b2)
    out = jax.block_until_ready(out)

    ref = reference(x, w1, b1, gamma, beta, w2, b2)
    assert out.shape == (B, out_features)
    assert jnp.allclose(out, ref, atol=1e-4, rtol=1e-4), "mismatch vs JAX reference"

    print("KERNEL_OK")
</pallas_src>

<mosaic_0001>
module attributes {stable_mosaic.version = 11 : i64} {
  func.func @kernel(%arg0: i32, %arg1: i32, %arg2: memref<8x32xf32, #tpu.memory_space<vmem>>, %arg3: memref<32x128xf32, #tpu.memory_space<vmem>>, %arg4: memref<1x128xf32, #tpu.memory_space<vmem>>, %arg5: memref<1x128xf32, #tpu.memory_space<vmem>>, %arg6: memref<128x128xf32, #tpu.memory_space<vmem>>, %arg7: memref<1x128xf32, #tpu.memory_space<vmem>>, %arg8: memref<8x128xf32, #tpu.memory_space<vmem>>, %arg9: memref<1x128xf32, #tpu.memory_space<vmem>>, %arg10: memref<1x128xf32, #tpu.memory_space<vmem>>, %arg11: memref<1x128xf32, #tpu.memory_space<vmem>>, %arg12: memref<1x128xf32, #tpu.memory_space<vmem>>) attributes {dimension_semantics = [#tpu.dimension_semantics<arbitrary>, #tpu.dimension_semantics<arbitrary>], iteration_bounds = array<i64: 2, 1>, scalar_prefetch = 0 : i64, scratch_operands = 4 : i64, tpu.core_type = #tpu.core_type<tc>, window_params = [{transform_indices = @transform_0, window_bounds = array<i64: 8, 32>}, {pipeline_mode = #tpu.pipeline_mode<synchronous>, transform_indices = @transform_1, window_bounds = array<i64: 32, 128>}, {pipeline_mode = #tpu.pipeline_mode<synchronous>, transform_indices = @transform_2, window_bounds = array<i64: 1, 128>}, {pipeline_mode = #tpu.pipeline_mode<synchronous>, transform_indices = @transform_3, window_bounds = array<i64: 1, 128>}, {pipeline_mode = #tpu.pipeline_mode<synchronous>, transform_indices = @transform_4, window_bounds = array<i64: 128, 128>}, {pipeline_mode = #tpu.pipeline_mode<synchronous>, transform_indices = @transform_5, window_bounds = array<i64: 1, 128>}, {transform_indices = @transform_6, window_bounds = array<i64: 8, 128>}]} {
    %c0 = arith.constant 0 : index
    %c0_0 = arith.constant 0 : index
    %0 = vector.load %arg2[%c0, %c0_0] : memref<8x32xf32, #tpu.memory_space<vmem>>, vector<8x32xf32>
    %c0_1 = arith.constant 0 : index
    %c0_2 = arith.constant 0 : index
    %1 = vector.load %arg3[%c0_1, %c0_2] : memref<32x128xf32, #tpu.memory_space<vmem>>, vector<32x128xf32>
    %cst = arith.constant dense<0.000000e+00> : vector<8x128xf32>
    %2 = tpu.matmul %0, %1, %cst {dimension_numbers = #tpu.dot_dimension_numbers<[1], [0], [0], [1], [0, 0, 1, 1], [], []>} : vector<8x32xf32>, vector<32x128xf32>, vector<8x128xf32> -> vector<8x128xf32>
    %c0_i32 = arith.constant 0 : i32
    %3 = arith.cmpi eq, %arg0, %c0_i32 : i32
    %4 = arith.extui %3 : i1 to i32
    %c0_i32_3 = arith.constant 0 : i32
    %5 = arith.cmpi ne, %4, %c0_i32_3 : i32
    scf.if %5 {
      %c0_i32_5 = arith.constant 0 : i32
      %9 = arith.cmpi eq, %arg1, %c0_i32_5 : i32
      %10 = arith.extui %9 : i1 to i32
      %c0_i32_6 = arith.constant 0 : i32
      %11 = arith.cmpi ne, %10, %c0_i32_6 : i32
      scf.if %11 {
        %cst_19 = arith.constant 0.000000e+00 : f32
        %26 = vector.broadcast %cst_19 : f32 to vector<1x128xf32>
        %c0_20 = arith.constant 0 : index
        %c0_21 = arith.constant 0 : index
        %27 = vector.load %arg9[%c0_20, %c0_21] : memref<1x128xf32, #tpu.memory_space<vmem>>, vector<1x128xf32>
        tpu.vector_store %arg9[%c0_20, %c0_21], %26 {strides = array<i32>} : memref<1x128xf32, #tpu.memory_space<vmem>>, vector<1x128xf32>,
        %cst_22 = arith.constant 0.000000e+00 : f32
        %28 = vector.broadcast %cst_22 : f32 to vector<1x128xf32>
        %c0_23 = arith.constant 0 : index
        %c0_24 = arith.constant 0 : index
        %29 = vector.load %arg10[%c0_23, %c0_24] : memref<1x128xf32, #tpu.memory_space<vmem>>, vector<1x128xf32>
        tpu.vector_store %arg10[%c0_23, %c0_24], %28 {strides = array<i32>} : memref<1x128xf32, #tpu.memory_space<vmem>>, vector<1x128xf32>,
      } else {
      }
      %c0_7 = arith.constant 0 : index
      %c0_8 = arith.constant 0 : index
      %12 = vector.load %arg9[%c0_7, %c0_8] : memref<1x128xf32, #tpu.memory_space<vmem>>, vector<1x128xf32>
      %cst_9 = arith.constant dense<0.000000e+00> : vector<128xf32>
      %13 = vector.multi_reduction <add>, %2, %cst_9 [0] : vector<8x128xf32> to vector<128xf32>
      %14 = vector.shape_cast %13 : vector<128xf32> to vector<1x128xf32>
      %15 = arith.addf %12, %14 : vector<1x128xf32>
      %c0_10 = arith.constant 0 : index
      %c0_11 = arith.constant 0 : index
      %16 = vector.load %arg9[%c0_10, %c0_11] : memref<1x128xf32, #tpu.memory_space<vmem>>, vector<1x128xf32>
      tpu.vector_store %arg9[%c0_10, %c0_11], %15 {strides = array<i32>} : memref<1x128xf32, #tpu.memory_space<vmem>>, vector<1x128xf32>,
      %c0_12 = arith.constant 0 : index
      %c0_13 = arith.constant 0 : index
      %17 = vector.load %arg10[%c0_12, %c0_13] : memref<1x128xf32, #tpu.memory_space<vmem>>, vector<1x128xf32>
      %18 = arith.mulf %2, %2 : vector<8x128xf32>
      %cst_14 = arith.constant dense<0.000000e+00> : vector<128xf32>
      %19 = vector.multi_reduction <add>, %18, %cst_14 [0] : vector<8x128xf32> to vector<128xf32>
      %20 = vector.shape_cast %19 : vector<128xf32> to vector<1x128xf32>
      %21 = arith.addf %17, %20 : vector<1x128xf32>
      %c0_15 = arith.constant 0 : index
      %c0_16 = arith.constant 0 : index
      %22 = vector.load %arg10[%c0_15, %c0_16] : memref<1x128xf32, #tpu.memory_space<vmem>>, vector<1x128xf32>
      tpu.vector_store %arg10[%c0_15, %c0_16], %21 {strides = array<i32>} : memref<1x128xf32, #tpu.memory_space<vmem>>, vector<1x128xf32>,
      %c0_i32_17 = arith.constant 0 : i32
      %23 = arith.cmpi eq, %arg1, %c0_i32_17 : i32
      %24 = arith.extui %23 : i1 to i32
      %c0_i32_18 = arith.constant 0 : i32
      %25 = arith.cmpi ne, %24, %c0_i32_18 : i32
      scf.if %25 {
        %c0_19 = arith.constant 0 : index
        %c0_20 = arith.constant 0 : index
        %26 = vector.load %arg9[%c0_19, %c0_20] : memref<1x128xf32, #tpu.memory_space<vmem>>, vector<1x128xf32>
        %cst_21 = arith.constant 1.250000e-01 : f32
        %27 = vector.broadcast %cst_21 : f32 to vector<1x128xf32>
        %28 = arith.mulf %26, %27 : vector<1x128xf32>
        %c0_22 = arith.constant 0 : index
        %c0_23 = arith.constant 0 : index
        %29 = vector.load %arg10[%c0_22, %c0_23] : memref<1x128xf32, #tpu.memory_space<vmem>>, vector<1x128xf32>
        %cst_24 = arith.constant 1.250000e-01 : f32
        %30 = vector.broadcast %cst_24 : f32 to vector<1x128xf32>
        %31 = arith.mulf %29, %30 : vector<1x128xf32>
        %32 = arith.mulf %28, %28 : vector<1x128xf32>
        %33 = arith.subf %31, %32 : vector<1x128xf32>
        %cst_25 = arith.constant 0.000000e+00 : f32
        %34 = vector.broadcast %cst_25 : f32 to vector<1x128xf32>
        %35 = arith.maximumf %33, %34 : vector<1x128xf32>
        %c0_26 = arith.constant 0 : index
        %c0_27 = arith.constant 0 : index
        %36 = vector.load %arg4[%c0_26, %c0_27] : memref<1x128xf32, #tpu.memory_space<vmem>>, vector<1x128xf32>
        %cst_28 = arith.constant 9.99999974E-6 : f32
        %37 = vector.broadcast %cst_28 : f32 to vector<1x128xf32>
        %38 = arith.addf %35, %37 : vector<1x128xf32>
        %39 = math.rsqrt %38 : vector<1x128xf32>
        %40 = arith.mulf %36, %39 : vector<1x128xf32>
        %c0_29 = arith.constant 0 : index
        %c0_30 = arith.constant 0 : index
        %41 = vector.load %arg11[%c0_29, %c0_30] : memref<1x128xf32, #tpu.memory_space<vmem>>, vector<1x128xf32>
        tpu.vector_store %arg11[%c0_29, %c0_30], %40 {strides = array<i32>} : memref<1x128xf32, #tpu.memory_space<vmem>>, vector<1x128xf32>,
        %c0_31 = arith.constant 0 : index
        %c0_32 = arith.constant 0 : index
        %42 = vector.load %arg5[%c0_31, %c0_32] : memref<1x128xf32, #tpu.memory_space<vmem>>, vector<1x128xf32>
        %43 = arith.mulf %28, %40 : vector<1x128xf32>
        %44 = arith.subf %42, %43 : vector<1x128xf32>
        %c0_33 = arith.constant 0 : index
        %c0_34 = arith.constant 0 : index
        %45 = vector.load %arg12[%c0_33, %c0_34] : memref<1x128xf32, #tpu.memory_space<vmem>>, vector<1x128xf32>
        tpu.vector_store %arg12[%c0_33, %c0_34], %44 {strides = array<i32>} : memref<1x128xf32, #tpu.memory_space<vmem>>, vector<1x128xf32>,
      } else {
      }
    } else {
    }
    %c1_i32 = arith.constant 1 : i32
    %6 = arith.cmpi eq, %arg0, %c1_i32 : i32
    %7 = arith.extui %6 : i1 to i32
    %c0_i32_4 = arith.constant 0 : i32
    %8 = arith.cmpi ne, %7, %c0_i32_4 : i32
    scf.if %8 {
      %c0_5 = arith.constant 0 : index
      %c0_6 = arith.constant 0 : index
      %9 = vector.load %arg11[%c0_5, %c0_6] : memref<1x128xf32, #tpu.memory_space<vmem>>, vector<1x128xf32>
      %10 = vector.broadcast %9 : vector<1x128xf32> to vector<8x128xf32>
      %11 = arith.mulf %2, %10 : vector<8x128xf32>
      %c0_7 = arith.constant 0 : index
      %c0_8 = arith.constant 0 : index
      %12 = vector.load %arg12[%c0_7, %c0_8] : memref<1x128xf32, #tpu.memory_space<vmem>>, vector<1x128xf32>
      %13 = vector.broadcast %12 : vector<1x128xf32> to vector<8x128xf32>
      %14 = arith.addf %11, %13 : vector<8x128xf32>
      %cst_9 = arith.constant 0.000000e+00 : f32
      %15 = vector.broadcast %cst_9 : f32 to vector<8x128xf32>
      %16 = arith.maximumf %14, %15 : vector<8x128xf32>
      %c0_10 = arith.constant 0 : index
      %c0_11 = arith.constant 0 : index
      %17 = vector.load %arg6[%c0_10, %c0_11] : memref<128x128xf32, #tpu.memory_space<vmem>>, vector<128x128xf32>
      %cst_12 = arith.constant dense<0.000000e+00> : vector<8x128xf32>
      %18 = tpu.matmul %16, %17, %cst_12 {dimension_numbers = #tpu.dot_dimension_numbers<[1], [0], [0], [1], [0, 0, 1, 1], [], []>} : vector<8x128xf32>, vector<128x128xf32>, vector<8x128xf32> -> vector<8x128xf32>
      %c0_13 = arith.constant 0 : index
      %c0_14 = arith.constant 0 : index
      %19 = vector.load %arg7[%c0_13, %c0_14] : memref<1x128xf32, #tpu.memory_space<vmem>>, vector<1x128xf32>
      %20 = vector.broadcast %19 : vector<1x128xf32> to vector<8x128xf32>
      %21 = arith.addf %18, %20 : vector<8x128xf32>
      %c0_15 = arith.constant 0 : index
      %c0_16 = arith.constant 0 : index
      %22 = vector.load %arg8[%c0_15, %c0_16] : memref<8x128xf32, #tpu.memory_space<vmem>>, vector<8x128xf32>
      tpu.vector_store %arg8[%c0_15, %c0_16], %21 {strides = array<i32>} : memref<8x128xf32, #tpu.memory_space<vmem>>, vector<8x128xf32>,
    } else {
    }
    return
  }
  func.func @transform_0(%arg0: i32, %arg1: i32) -> (i32, i32) {
    %c0_i32 = arith.constant 0 : i32
    %c0_i32_0 = arith.constant 0 : i32
    return %arg1, %c0_i32 : i32, i32
  }
  func.func @transform_1(%arg0: i32, %arg1: i32) -> (i32, i32) {
    %c0_i32 = arith.constant 0 : i32
    %c0_i32_0 = arith.constant 0 : i32
    %c0_i32_1 = arith.constant 0 : i32
    return %c0_i32, %c0_i32_0 : i32, i32
  }
  func.func @transform_2(%arg0: i32, %arg1: i32) -> (i32, i32) {
    %c0_i32 = arith.constant 0 : i32
    %c0_i32_0 = arith.constant 0 : i32
    %c0_i32_1 = arith.constant 0 : i32
    return %c0_i32, %c0_i32_0 : i32, i32
  }
  func.func @transform_3(%arg0: i32, %arg1: i32) -> (i32, i32) {
    %c0_i32 = arith.constant 0 : i32
    %c0_i32_0 = arith.constant 0 : i32
    %c0_i32_1 = arith.constant 0 : i32
    return %c0_i32, %c0_i32_0 : i32, i32
  }
  func.func @transform_4(%arg0: i32, %arg1: i32) -> (i32, i32) {
    %c0_i32 = arith.constant 0 : i32
    %c0_i32_0 = arith.constant 0 : i32
    %c0_i32_1 = arith.constant 0 : i32
    return %c0_i32, %c0_i32_0 : i32, i32
  }
  func.func @transform_5(%arg0: i32, %arg1: i32) -> (i32, i32) {
    %c0_i32 = arith.constant 0 : i32
    %c0_i32_0 = arith.constant 0 : i32
    %c0_i32_1 = arith.constant 0 : i32
    return %c0_i32, %c0_i32_0 : i32, i32
  }
  func.func @transform_6(%arg0: i32, %arg1: i32) -> (i32, i32) {
    %0 = arith.muli %arg0, %arg1 : i32
    %c0_i32 = arith.constant 0 : i32
    %c0_i32_0 = arith.constant 0 : i32
    return %0, %c0_i32 : i32, i32
  }
}

</mosaic_0001>

<bundles_post_ra>
// kernel: tpu_custom_call.1
= control target key start
LH: loop header
LB: loop body
LE: loop exit
PB: predicated region body
PF: predicated region fallthrough
CT: control target
= control target key end

     0   :  { %11 = vsyncpa [#allocation7], 0  ;;  %s1118_s0 = inlined_call_operand.hbm [shape: f32[8,32], index: 0, kind: input, shape index: {}]   ;;  %s1119_s1 = inlined_call_operand.hbm [shape: f32[32,128], index: 1, kind: input, shape index: {}]   ;;  %s1120_s2 = inlined_call_operand.vmem [shape: f32[1,128], index: 2, kind: input, shape index: {}]   ;;  %s1121_s3 = inlined_call_operand.vmem [shape: f32[1,128], index: 3, kind: input, shape index: {}]   ;;  %s1122_s4 = inlined_call_operand.hbm [shape: f32[128,128], index: 4, kind: input, shape index: {}]   ;;  %s1123_s5 = inlined_call_operand.vmem [shape: f32[1,128], index: 5, kind: input, shape index: {}]   ;;  %s1124_s6 = inlined_call_operand.hbm [shape: f32[8,128], index: 6, kind: output, shape index: {}]  }
   0x1   :  { %12 = vsyncpa [#allocation10], 0 }
   0x2   :  { %13 = vsyncpa [#allocation8], 0 }
   0x3   :  { %15 = vsyncpa [#allocation8 + $0x1], 0  ;;  %s987_s21 = smov 0   ;;  %s989_s22 = smov 0  }
   0x4   :  { %s991_s23 = smov 0  }
   0x5 LB: > { %s941_s24 = smov [#allocation9]   ;;  %s639_s26 = sadd.s32 4294967295, %s939_s23   ;;  %s939_s23 = sphi %s991_s23, %s21_s23   ;;  %s935_s22 = sphi %s989_s22, %s1134_s22   ;;  %s931_s21 = sphi %s987_s21, %s1133_s21  }
   0x6   : > { %s222_s25 = sshll.u32 %s941_s24, 4  ;;  %s640_s27 = sadd.s32 4294967294, %s939_s23   ;;  %s223_s25 = int_to_ptr.vmem [resolvable:$true] %s222_s25 }
   0x7   : > { %p641_p0 = scmp.ge.s32.totalorder %s939_s23, 1  ;;  %p197_p1 = scmp.lt.s32.totalorder %s939_s23, 3 }
   0x8   : > { %p1008_p2 = scmp.eq.s32.totalorder %s639_s26, 0  ;;  %s33_s7 = sadd.s32 1, %s935_s22 }
   0x9   : > { %p1012_p3 = pnand %p641_p0, %p197_p1  ;;  %p1025_p6 = scmp.ge.s32.totalorder %s33_s7, 2 }
   0xa   : > { %s1127_s28 = scalar_select %p1008_p2, 1, 0 }
   0xb   : > { %p743_p4 = pneg %p1012_p3  ;;  %s814_s9 = scalar_lea.vmem %s223_s25, 512 }
   0xc   : > { %p815_p8 = scmp.ne.s32.totalorder %s223_s25, %s814_s9  ;;  %p822_p11 = scmp.lt.s32.totalorder %s223_s25, %s223_s25 }
   0xd   : > { %p1020_p5 = pnand %p1008_p2, %p743_p4  ;;  %p823_p12 = scmp.lt.s32.totalorder %s814_s9, %s814_s9 }
   0xf   : > { %p805_p7 = pneg %p1020_p5  ;;  %p824_p13 = por %p823_p12, %p822_p11 }
  0x11   : > { %p817_p9 = pnand %p815_p8, %p805_p7 }
  0x13   : > { %p818_p10 = pneg %p817_p9 }
  0x15   : > { %p825_p0 = pnand %p824_p13, %p818_p10 }
  0x17   : > { %828 = shalt.err (!%p825_p0)
}
  0x18   : > { %s942_s10 = smov 128   ;;  %s943_s11 = smov 8  }
  0x19   : > { %749 = dma.hbm_to_vmem [thread:$0]  (!%p1020_p5), %s1119_s1, 512, %s223_s25, [#allocation10], %s942_s10, %s942_s10, %s943_s11  }
  0x1a   : > { %s1136_s7 = smov (%p1025_p6, %s33_s7), 0  ;;  %s944_s14 = smov [#allocation6]  }
  0x1b   : > { %s212_s15 = sshll.u32 %s944_s14, 4  ;;  %s945_s16 = smov [#allocation11]   ;;  %s213_s15 = int_to_ptr.vmem [resolvable:$true] %s212_s15 }
  0x1c   : > { %s241_s17 = sshll.u32 %s945_s16, 4  ;;  %s840_s18 = scalar_lea.vmem %s213_s15, 128  ;;  %s242_s17 = int_to_ptr.vmem [resolvable:$true] %s241_s17 }
  0x1d   : > { %p841_p1 = scmp.ne.s32.totalorder %s213_s15, %s840_s18  ;;  %p848_p9 = scmp.lt.s32.totalorder %s213_s15, %s213_s15 }
  0x1e   : > { %p849_p10 = scmp.lt.s32.totalorder %s840_s18, %s840_s18 }
  0x1f   : > { %p843_p4 = pnand %p841_p1, %p805_p7 }
  0x20   : > { %p850_p11 = por %p849_p10, %p848_p9 }
  0x21   : > { %p844_p8 = pneg %p843_p4 }
  0x23   : > { %p851_p12 = pnand %p850_p11, %p844_p8 }
  0x25   : > { %854 = shalt.err (!%p851_p12)
}
  0x26   : > { %746 = dma.hbm_to_vmem [thread:$0]  (!%p1020_p5), %s1118_s0, 128, %s213_s15, [#allocation7]  }
  0x27   : > { %s866_s24 = scalar_lea.vmem %s242_s17, 2048  ;;  %p874_p1 = scmp.lt.s32.totalorder %s242_s17, %s242_s17 }
  0x28   : > { %p867_p6 = scmp.ne.s32.totalorder %s242_s17, %s866_s24  ;;  %p875_p4 = scmp.lt.s32.totalorder %s866_s24, %s866_s24 }
  0x2a   : > { %p869_p13 = pnand %p867_p6, %p805_p7  ;;  %p876_p2 = por %p875_p4, %p874_p1 }
  0x2c   : > { %p870_p0 = pneg %p869_p13 }
  0x2e   : > { %p877_p9 = pnand %p876_p2, %p870_p0 }
  0x30   : > { %880 = shalt.err (!%p877_p9)
}
  0x31   : > { %752 = dma.hbm_to_vmem [thread:$0]  (!%p1020_p5), %s1122_s4, 2048, %s242_s17, [#allocation10], %s942_s10, %s942_s10, %s943_s11  }
  0x32   : > { %260 = sbr.rel (%p1012_p3) target bundleno = 564 (0x234), region = 44  ;;  %p1131_p7 = scmp.ne.s32.totalorder (!%p1012_p3), %s1127_s28, 0 }
  0x37   : > { %918 = dma.done.wait (%p1131_p7), [#allocation7], 128  }
  0x38   : > { %920 = vsyncadd (%p1131_p7), [#allocation7], 4294967168 }
  0x39   : > { %922 = dma.done.wait (%p1131_p7), [#allocation10], 2560  }
  0x3a   : > { %924 = vsyncadd (%p1131_p7), [#allocation10], 4294964736  ;;  %v946_v0 = vmov 0.0   ;;  %vm947_vm0 = vmmov 0   ;;  %v298_v1 = vld [vmem:[#allocation9 + $0x18] sm:$0xff]  ;;  %v297_v2 = vld [vmem:[#allocation9 + $0x10] sm:$0xff] }
  0x3b   : > { %681 = vmatprep.subr.mxu0 %v946_v0  ;;  %689 = vmatprep.mubr.msk.f32.mxu0 %vm947_vm0, %v946_v0  ;;  %v296_v3 = vld [vmem:[#allocation9 + $0x8] sm:$0xff]  ;;  %v295_v4 = vld [vmem:[#allocation9] sm:$0xff]  ;;  %v294_v5 = vld [vmem:[#allocation6] sm:$0xff]  ;;  %vm299_vm1 = vcmask 261120   ;;  %p650_p2 = scmp.ne.s32.totalorder %s931_s21, 0 }
  0x3c   : > { %682 = vmatpush3.msra.mxu0 %v298_v1 }
  0x3d   : > { %683 = vmatprep.subr.mxu0 %v946_v0 }
  0x3e   : > { %684 = vmatpush3.msra.mxu0 %v297_v2 }
  0x3f   : > { %685 = vmatprep.subr.mxu0 %v946_v0 }
  0x40   : > { %686 = vmatpush3.msra.mxu0 %v296_v3 }
  0x41   : > { %687 = vmatprep.subr.mxu0 %v946_v0 }
  0x42   : > { %688 = vmatpush3.msra.mxu0 %v295_v4 }
  0x43   : > { %690 = vmatmul.mubr.msk.f32.vlgmr.msra.gmra.mxu0 %vm299_vm1, %v294_v5 }
 0x101   : > { %376 = sbr.rel (%p650_p2) target bundleno = 315 (0x13b), region = 60 }
 0x103   : > { %v1075_v6 = vpop.f32.mrf.mxu0 }
 0x105   : > { %v691_v7 = vpop.f32.mrf.mxu0 }
 0x106   : > { %v384_v8 = vrot.slane %v1075_v6, 4  ;;  %v393_v9 = vmul.f32 %v1075_v6, %v1075_v6  ;;  %v948_v10 = vmov 0.0   ;;  %v412_v34 = vld [vmem:[%s1120_s2] sm:$0x1] }
 0x107   : > { %381 = vst [vmem:[#allocation2] sm:$0x1] %v948_v10  ;;  %382 = vst [vmem:[#allocation3] sm:$0x1] %v948_v10  ;;  %v417_v37 = vld [vmem:[%s1121_s3] sm:$0x1] }
 0x108   : > { %v385_v11 = vadd.f32 %v384_v8, %v1075_v6  ;;  %v394_v12 = vrot.slane %v393_v9, 4 }
 0x10a   : > { %v386_v13 = vrot.slane %v385_v11, 2  ;;  %v395_v14 = vadd.f32 %v394_v12, %v393_v9 }
 0x10c   : > { %v387_v15 = vadd.f32 %v386_v13, %v385_v11  ;;  %v396_v16 = vrot.slane %v395_v14, 2 }
 0x10e   : > { %v388_v17 = vrot.slane %v387_v15, 1  ;;  %v397_v18 = vadd.f32 %v396_v16, %v395_v14  ;;  %v383_v19 = vld [vmem:[#allocation2] sm:$0x1]  ;;  %v392_v22 = vld [vmem:[#allocation3] sm:$0x1] }
 0x110   : > { %v389_v20 = vadd.f32 %v388_v17, %v387_v15  ;;  %v398_v21 = vrot.slane %v397_v18, 1 }
 0x112   : > { %v390_v23 = vadd.f32 %v389_v20, %v383_v19  ;;  %v399_v24 = vadd.f32 %v398_v21, %v397_v18 }
 0x114   : > { %391 = vst [vmem:[#allocation2] sm:$0x1] %v390_v23  ;;  %v400_v25 = vadd.f32 %v399_v24, %v392_v22 }
 0x116   : > { %401 = vst [vmem:[#allocation3] sm:$0x1] %v400_v25 }
 0x11b   : > { %v405_v26 = vld [vmem:[#allocation2] sm:$0x1] }
 0x11c   : > { %v406_v27 = vmul.f32 0.125, %v405_v26 }
 0x11d   : > { %v407_v28 = vld [vmem:[#allocation3] sm:$0x1] }
 0x11e   : > { %v408_v29 = vmul.f32 0.125, %v407_v28  ;;  %v409_v30 = vmul.f32 %v406_v27, %v406_v27 }
 0x120   : > { %v410_v31 = vsub.f32 %v408_v29, %v409_v30 }
 0x122   : > { %v411_v32 = vmax.f32 %v410_v31, 0.0 }
 0x124   : > { %v413_v33 = vadd.f32 1e-05, %v411_v32 }
 0x126   : > { %801 = vrsqrt.f32 %v413_v33 }
 0x133   : > { %v802_v35 = vpop.eup %801 }
 0x134   : > { %v415_v36 = vmul.f32 %v802_v35, %v412_v34 }
 0x136   : > { %416 = vst [vmem:[#allocation4] sm:$0x1] %v415_v36  ;;  %v418_v38 = vmul.f32 %v415_v36, %v406_v27 }
 0x138   : > { %v419_v39 = vsub.f32 %v417_v37, %v418_v38 }
 0x13a   : > { %420 = vst [vmem:[#allocation5] sm:$0x1] %v419_v39 }
 0x13b PF: > { %p651_p3 = scmp.ne.s32.totalorder %s931_s21, 1 }
 0x13d   : > { %424 = sbr.rel (%p651_p3) target bundleno = 551 (0x227), region = 72 }
 0x142   : > { %v457_v40 = vld [vmem:[#allocation11 + $0x78] sm:$0xff]  ;;  %v949_v41 = vmov 0.0   ;;  %v456_v42 = vld [vmem:[#allocation11 + $0x70] sm:$0xff]  ;;  %vm950_vm2 = vmmov 0   ;;  %v455_v43 = vld [vmem:[#allocation11 + $0x68] sm:$0xff] }
 0x143   : > { %692 = vmatprep.subr.mxu0 %v949_v41  ;;  %724 = vmatprep.mubr.msk.f32.mxu0 %vm950_vm2, %v949_v41  ;;  %v454_v44 = vld [vmem:[#allocation11 + $0x60] sm:$0xff]  ;;  %v453_v45 = vld [vmem:[#allocation11 + $0x58] sm:$0xff]  ;;  %v452_v46 = vld [vmem:[#allocation11 + $0x50] sm:$0xff] }
 0x144   : > { %693 = vmatpush3.msra.mxu0 %v457_v40  ;;  %v451_v47 = vld [vmem:[#allocation11 + $0x48] sm:$0xff]  ;;  %v450_v48 = vld [vmem:[#allocation11 + $0x40] sm:$0xff]  ;;  %v449_v49 = vld [vmem:[#allocation11 + $0x38] sm:$0xff] }
 0x145   : > { %694 = vmatprep.subr.mxu0 %v949_v41  ;;  %v448_v50 = vld [vmem:[#allocation11 + $0x30] sm:$0xff]  ;;  %v447_v52 = vld [vmem:[#allocation11 + $0x28] sm:$0xff]  ;;  %v446_v53 = vld [vmem:[#allocation11 + $0x20] sm:$0xff] }
 0x146   : > { %695 = vmatpush3.msra.mxu0 %v456_v42  ;;  %v652_v51 = vld [vmem:[#allocation4] ss:$0 sm:$0xff]  ;;  %v653_v55 = vld [vmem:[#allocation5] ss:$0 sm:$0xff]  ;;  %v445_v56 = vld [vmem:[#allocation11 + $0x18] sm:$0xff] }
 0x147   : > { %696 = vmatprep.subr.mxu0 %v949_v41  ;;  %v432_v54 = vmul.f32 %v652_v51, %v1075_v6  ;;  %v444_v57 = vld [vmem:[#allocation11 + $0x10] sm:$0xff]  ;;  %v443_v59 = vld [vmem:[#allocation11 + $0x8] sm:$0xff]  ;;  %v442_v60 = vld [vmem:[#allocation11] sm:$0xff] }
 0x148   : > { %697 = vmatpush3.msra.mxu0 %v455_v43  ;;  %v654_v62 = vld [vmem:[%s1123_s5] ss:$0 sm:$0xff] }
 0x149   : > { %698 = vmatprep.subr.mxu0 %v949_v41  ;;  %v440_v58 = vadd.f32 %v653_v55, %v432_v54 }
 0x14a   : > { %699 = vmatpush3.msra.mxu0 %v454_v44 }
 0x14b   : > { %700 = vmatprep.subr.mxu0 %v949_v41  ;;  %v441_v61 = vmax.f32 %v440_v58, 0.0 }
 0x14c   : > { %701 = vmatpush3.msra.mxu0 %v453_v45 }
 0x14d   : > { %702 = vmatprep.subr.mxu0 %v949_v41 }
 0x14e   : > { %703 = vmatpush3.msra.mxu0 %v452_v46 }
 0x14f   : > { %704 = vmatprep.subr.mxu0 %v949_v41 }
 0x150   : > { %705 = vmatpush3.msra.mxu0 %v451_v47 }
 0x151   : > { %706 = vmatprep.subr.mxu0 %v949_v41 }
 0x152   : > { %707 = vmatpush3.msra.mxu0 %v450_v48 }
 0x153   : > { %708 = vmatprep.subr.mxu0 %v949_v41 }
 0x154   : > { %709 = vmatpush3.msra.mxu0 %v449_v49 }
 0x155   : > { %710 = vmatprep.subr.mxu0 %v949_v41 }
 0x156   : > { %711 = vmatpush3.msra.mxu0 %v448_v50 }
 0x157   : > { %712 = vmatprep.subr.mxu0 %v949_v41 }
 0x158   : > { %713 = vmatpush3.msra.mxu0 %v447_v52 }
 0x159   : > { %714 = vmatprep.subr.mxu0 %v949_v41 }
 0x15a   : > { %715 = vmatpush3.msra.mxu0 %v446_v53 }
 0x15b   : > { %716 = vmatprep.subr.mxu0 %v949_v41 }
 0x15c   : > { %717 = vmatpush3.msra.mxu0 %v445_v56 }
 0x15d   : > { %718 = vmatprep.subr.mxu0 %v949_v41 }
 0x15e   : > { %719 = vmatpush3.msra.mxu0 %v444_v57 }
 0x15f   : > { %720 = vmatprep.subr.mxu0 %v949_v41 }
 0x160   : > { %721 = vmatpush3.msra.mxu0 %v443_v59 }
 0x161   : > { %722 = vmatprep.subr.mxu0 %v949_v41 }
 0x162   : > { %723 = vmatpush3.msra.mxu0 %v442_v60 }
 0x163   : > { %725 = vmatmul.mubr.f32.vlgmr.msra.gmra.mxu0 %v441_v61 }
 0x223   : > { %v531_v63 = vpop.f32.mrf.mxu0 }
 0x224   : > { %v532_v0 = vadd.f32 %v654_v62, %v531_v63 }
 0x225   : > { %v726_v1 = vpop.f32.mrf.mxu0 }
 0x226   : > { %535 = vst [vmem:[#allocation12] sm:$0xff] %v532_v0 }
 0x227 PF: > { %p1095_p5 = scmp.eq.s32.totalorder %s639_s26, 1  ;;  %s951_s12 = smov [#allocation12]  }
 0x228   : > { %s551_s13 = sshll.u32 %s951_s12, 4  ;;  %s552_s13 = int_to_ptr.vmem [resolvable:$true] %s551_s13 }
 0x229   : > { %s881_s14 = scalar_lea.vmem %s552_s13, 128  ;;  %s887_s15 = scalar_lea.vmem %s552_s13, 256 }
 0x22a   : > { %p882_p8 = scmp.ne.s32.totalorder %s552_s13, %s881_s14  ;;  %p888_p12 = scmp.lt.s32.totalorder %s552_s13, %s552_s13 }
 0x22b   : > { %p889_p6 = scmp.lt.s32.totalorder %s887_s15, %s881_s14 }
 0x22c   : > { %p883_p10 = pnand %p882_p8, %p1095_p5 }
 0x22d   : > { %p890_p13 = por %p889_p6, %p888_p12 }
 0x22e   : > { %p884_p11 = pneg %p883_p10 }
 0x230   : > { %p891_p0 = pnand %p890_p13, %p884_p11 }
 0x232   : > { %894 = shalt.err (!%p891_p0)
}
 0x233   : > { %740 = dma.vmem_to_hbm [thread:$0]  (%p1095_p5), %s552_s13, 128, %s1124_s6, [#allocation8]  }
 0x234 PF: > { %p764_p1 = scmp.ge.s32.totalorder %s939_s23, 2  ;;  %p765_p4 = scmp.eq.s32.totalorder %s640_s27, 1 }
 0x236   : > { %p754_p9 = pnand %p765_p4, %p764_p1 }
 0x238   : > { %p755_p7 = pneg %p754_p9 }
 0x23a   : > { %926 = dma.done.wait (%p755_p7), [#allocation8], 128  }
 0x23b   : > { %928 = vsyncadd (%p755_p7), [#allocation8], 4294967168  ;;  %s21_s23 = sadd.s32 1, %s939_s23   ;;  %s1133_s21 = smov %s935_s22 }
 0x23c   : > { %p18_p2 = scmp.ge.s32.totalorder %s21_s23, 4   ;;  %s1134_s22 = smov %s1136_s7 }
 0x23e   :  { %20 = sbr.rel (!%p18_p2) target bundleno = 5 (0x5), region = 106 }
 0x243   :  { %569 = vsyncpa [#allocation7], 1 }
 0x244   :  { %571 = vsyncpa [#allocation7 + $0x1], 1 }
 0x245   :  { %572 = vsyncpa [#allocation10], 1 }
 0x246   :  { %573 = vsyncpa [#allocation8], 1 }
 0x247   :  { %575 = vsyncpa [#allocation8 + $0x1], 1 }

</bundles_post_ra>
